<compile_context>
chip_gen: v7x
topology: tpu7x:2x2x1
jax: 0.10.0
libtpu: 0.0.40
codegen_flags: <defaults>
</compile_context>

<pallas_src>
import math

import jax
import jax.numpy as jnp
from jax.experimental import pallas as pl
from jax.experimental.pallas import tpu as pltpu


# ---------------------------------------------------------------------------
# Kernel
# ---------------------------------------------------------------------------
def _dense_kernel(x_ref, w_ref, *rest):
    """One grid step: a (Dblk, K) slab of independent (B,Q)@(Q,T) matmuls.

    x_ref: (B, Dblk, K, Q)   w_ref: (Dblk, K, T, Q)
    optional b_ref: (Dblk, K, T)
    o_ref: (B, Dblk, K, T)
    """
    if len(rest) == 2:
        b_ref, o_ref = rest
        b_f32 = b_ref[...].astype(jnp.float32)   # hoist: load bias block once
    else:
        (o_ref,) = rest
        b_f32 = None

    d_blk, k_dim, _t, _q = w_ref.shape

    # Static unroll over the slab: each iteration is a small 2-D MXU dot whose
    # result is stored immediately (short live ranges; overlaps with the
    # pipelined DMAs of the next block).
    for d in range(d_blk):
        for k in range(k_dim):
            acc = jax.lax.dot_general(
                x_ref[:, d, k, :],            # (B, Q)
                w_ref[d, k],                  # (T, Q)
                dimension_numbers=(((1,), (1,)), ((), ())),
                preferred_element_type=jnp.float32,
            )                                 # (B, T), f32 accumulation
            if b_f32 is not None:
                acc = acc + b_f32[d, k:k + 1, :]   # (1, T) broadcast
            o_ref[:, d, k, :] = acc.astype(o_ref.dtype)


# ---------------------------------------------------------------------------
# Block-size / VMEM heuristics
# ---------------------------------------------------------------------------
def _vmem_budget_bytes():
    """~75% of per-core VMEM capacity (64 MiB on v7x, 128 MiB on v5e/v6e)."""
    try:
        info = pltpu.get_tpu_info()
        cap = getattr(info, "vmem_capacity_bytes", None)
        if cap:
            return int(0.75 * cap)
    except Exception:
        pass
    return 48 * 1024 * 1024  # conservative fallback (fits v7x physical VMEM)


def _choose_d_block(B, D, K, T, Q, itemsize, vmem_budget_bytes, max_unroll=64):
    """Largest divisor of D whose double-buffered block fits the VMEM budget.

    Prefers an even number of grid steps (v7x has 2 TensorCores sharing the
    'parallel' grid axis) and caps the in-kernel unroll count.
    """
    def r8(n):
        return -(-n // 8) * 8

    def r128(n):
        return -(-n // 128) * 128

    def footprint(dblk):
        # Lane/sublane padding applies to the trailing two dims of each block;
        # x2 for double buffering, plus f32 accumulator headroom.
        x_b = B * dblk * r8(K) * r128(Q) * itemsize
        w_b = dblk * K * r8(T) * r128(Q) * itemsize
        o_b = B * dblk * r8(K) * r128(T) * itemsize
        b_b = dblk * r8(K) * r128(T) * itemsize
        acc = B * dblk * r8(K) * r128(T) * 4
        return 2 * (x_b + w_b + o_b + b_b) + acc

    unroll_cap = max(1, max_unroll // max(K, 1))
    candidates = [d for d in range(1, D + 1)
                  if D % d == 0 and d <= unroll_cap
                  and footprint(d) <= vmem_budget_bytes]
    if not candidates:
        candidates = [1]
    even_steps = [d for d in candidates if (D // d) % 2 == 0]
    pool = even_steps if even_steps else candidates
    return max(pool)


# ---------------------------------------------------------------------------
# Wrapper
# ---------------------------------------------------------------------------
def my_dense(x, w, b=None, *, d_block=None, compute_dtype=None):
    """Pallas implementation of myDense.forward.

    x: (B, D, K, Q)    w: (D, K, T, Q)    b: (D, K, T) or None
    returns: (B, D, K, T)  == einsum('dktq,bdkq->bdkt', w, x) [+ b]

    compute_dtype: optionally cast x/w (e.g. jnp.bfloat16) before the kernel
    to halve HBM traffic; accumulation stays f32 and the output keeps the
    original x dtype. Default None preserves exact f32 semantics.
    """
    B, D, K, Q = x.shape
    Dw, Kw, T, Qw = w.shape
    assert (Dw, Kw, Qw) == (D, K, Q)
    if b is not None:
        assert b.shape == (D, K, T)

    out_dtype = x.dtype
    if compute_dtype is not None:
        x = x.astype(compute_dtype)
        w = w.astype(compute_dtype)
        if b is not None:
            b = b.astype(compute_dtype)

    itemsize = jnp.dtype(x.dtype).itemsize
    budget = _vmem_budget_bytes()
    dblk = d_block if d_block is not None else _choose_d_block(
        B, D, K, T, Q, itemsize, budget)
    assert D % dblk == 0, "d_block must divide D"
    grid = (D // dblk,)

    # Blocks on the ORIGINAL layouts — no wrapper transposes. Trailing two
    # dims of every block equal the full array dims, so (8,128) tiling rules
    # are satisfied for any K/T/Q.
    x_spec = pl.BlockSpec((B, dblk, K, Q), lambda i: (0, i, 0, 0))
    w_spec = pl.BlockSpec((dblk, K, T, Q), lambda i: (i, 0, 0, 0))
    o_spec = pl.BlockSpec((B, dblk, K, T), lambda i: (0, i, 0, 0))
    out_shape = jax.ShapeDtypeStruct((B, D, K, T), out_dtype)

    cparams = pltpu.CompilerParams(
        dimension_semantics=("parallel",),
        vmem_limit_bytes=budget,
    )

    in_specs = [x_spec, w_spec]
    args = [x, w]
    if b is not None:
        in_specs.append(pl.BlockSpec((dblk, K, T), lambda i: (i, 0, 0)))
        args.append(b)

    return pl.pallas_call(
        _dense_kernel,
        grid=grid,
        in_specs=in_specs,
        out_specs=o_spec,
        out_shape=out_shape,
        compiler_params=cparams,
    )(*args)


# ---------------------------------------------------------------------------
# Parameter init (mimics kaiming_normal_(mode='fan_out', relu))
# ---------------------------------------------------------------------------
def init_params(key, dim_d, dim_k, dense_dim, bias=False):
    kw, kb = jax.random.split(key)
    # PyTorch fan_out for a (d, k, t, q) tensor: size(0) * prod(shape[2:]).
    fan_out = dim_d * dense_dim * dense_dim
    std = math.sqrt(2.0) / math.sqrt(fan_out)
    w = std * jax.random.normal(kw, (dim_d, dim_k, dense_dim, dense_dim),
                                dtype=jnp.float32)
    b = None
    if bias:
        b = jax.random.normal(kb, (dim_d, dim_k, dense_dim), dtype=jnp.float32)
    return w, b


if __name__ == "__main__":
    key = jax.random.PRNGKey(0)
    k_x, k_p = jax.random.split(key)

    B, dim_d, dim_k, dense_dim = 8, 4, 3, 16
    use_bias = True

    x = jax.random.normal(k_x, (B, dim_d, dim_k, dense_dim), dtype=jnp.float32)
    w, b = init_params(k_p, dim_d, dim_k, dense_dim, bias=use_bias)

    # Bias path.
    out = jax.block_until_ready(my_dense(x, w, b))
    ref = jnp.einsum("dktq,bdkq->bdkt", w, x) + b
    assert out.shape == (B, dim_d, dim_k, dense_dim)
    assert jnp.allclose(out, ref, atol=1e-5, rtol=1e-5)

    # No-bias path (trace-time specialization of the same kernel).
    out_nb = jax.block_until_ready(my_dense(x, w, None))
    ref_nb = jnp.einsum("dktq,bdkq->bdkt", w, x)
    assert jnp.allclose(out_nb, ref_nb, atol=1e-5, rtol=1e-5)

    print("KERNEL_OK")
</pallas_src>

<mosaic_0001>
module attributes {stable_mosaic.version = 11 : i64} {
  func.func @_dense_kernel(%arg0: i32, %arg1: memref<8x2x3x16xf32, #tpu.memory_space<vmem>>, %arg2: memref<2x3x16x16xf32, #tpu.memory_space<vmem>>, %arg3: memref<2x3x16xf32, #tpu.memory_space<vmem>>, %arg4: memref<8x2x3x16xf32, #tpu.memory_space<vmem>>) attributes {dimension_semantics = [#tpu.dimension_semantics<parallel>], iteration_bounds = array<i64: 2>, scalar_prefetch = 0 : i64, scratch_operands = 0 : i64, tpu.core_type = #tpu.core_type<tc>, window_params = [{transform_indices = @transform_0, window_bounds = array<i64: 8, 2, 3, 16>}, {transform_indices = @transform_1, window_bounds = array<i64: 2, 3, 16, 16>}, {transform_indices = @transform_2, window_bounds = array<i64: 2, 3, 16>}, {transform_indices = @transform_3, window_bounds = array<i64: 8, 2, 3, 16>}]} {
    %c0 = arith.constant 0 : index
    %c0_0 = arith.constant 0 : index
    %c0_1 = arith.constant 0 : index
    %0 = vector.load %arg3[%c0, %c0_0, %c0_1] : memref<2x3x16xf32, #tpu.memory_space<vmem>>, vector<2x3x16xf32>
    %c0_2 = arith.constant 0 : index
    %c0_3 = arith.constant 0 : index
    %c0_4 = arith.constant 0 : index
    %c0_5 = arith.constant 0 : index
    %1 = vector.load %arg1[%c0_2, %c0_3, %c0_4, %c0_5] : memref<8x2x3x16xf32, #tpu.memory_space<vmem>>, vector<8x1x1x16xf32>
    %2 = vector.shape_cast %1 : vector<8x1x1x16xf32> to vector<8x16xf32>
    %c0_6 = arith.constant 0 : index
    %c0_7 = arith.constant 0 : index
    %c0_8 = arith.constant 0 : index
    %c0_9 = arith.constant 0 : index
    %3 = vector.load %arg2[%c0_6, %c0_7, %c0_8, %c0_9] : memref<2x3x16x16xf32, #tpu.memory_space<vmem>>, vector<1x1x16x16xf32>
    %4 = vector.shape_cast %3 : vector<1x1x16x16xf32> to vector<16x16xf32>
    %cst = arith.constant dense<0.000000e+00> : vector<8x16xf32>
    %5 = tpu.matmul %2, %4, %cst {dimension_numbers = #tpu.dot_dimension_numbers<[1], [1], [0], [0], [0, 0, 1, 0], [], []>} : vector<8x16xf32>, vector<16x16xf32>, vector<8x16xf32> -> vector<8x16xf32>
    %6 = vector.extract_strided_slice %0 {offsets = [0, 0, 0], sizes = [1, 1, 16], strides = [1, 1, 1]} : vector<2x3x16xf32> to vector<1x1x16xf32>
    %7 = vector.shape_cast %6 : vector<1x1x16xf32> to vector<1x16xf32>
    %8 = vector.broadcast %7 : vector<1x16xf32> to vector<8x16xf32>
    %9 = arith.addf %5, %8 : vector<8x16xf32>
    %c0_10 = arith.constant 0 : index
    %c0_11 = arith.constant 0 : index
    %c0_12 = arith.constant 0 : index
    %c0_13 = arith.constant 0 : index
    %10 = vector.load %arg4[%c0_10, %c0_11, %c0_12, %c0_13] : memref<8x2x3x16xf32, #tpu.memory_space<vmem>>, vector<8x1x1x16xf32>
    %11 = vector.shape_cast %10 : vector<8x1x1x16xf32> to vector<8x16xf32>
    %12 = vector.shape_cast %9 : vector<8x16xf32> to vector<8x1x1x16xf32>
    tpu.vector_store %arg4[%c0_10, %c0_11, %c0_12, %c0_13], %12 {strides = array<i32>} : memref<8x2x3x16xf32, #tpu.memory_space<vmem>>, vector<8x1x1x16xf32>,
    %c0_14 = arith.constant 0 : index
    %c0_15 = arith.constant 0 : index
    %c1 = arith.constant 1 : index
    %c0_16 = arith.constant 0 : index
    %13 = vector.load %arg1[%c0_14, %c0_15, %c1, %c0_16] : memref<8x2x3x16xf32, #tpu.memory_space<vmem>>, vector<8x1x1x16xf32>
    %14 = vector.shape_cast %13 : vector<8x1x1x16xf32> to vector<8x16xf32>
    %c0_17 = arith.constant 0 : index
    %c1_18 = arith.constant 1 : index
    %c0_19 = arith.constant 0 : index
    %c0_20 = arith.constant 0 : index
    %15 = vector.load %arg2[%c0_17, %c1_18, %c0_19, %c0_20] : memref<2x3x16x16xf32, #tpu.memory_space<vmem>>, vector<1x1x16x16xf32>
    %16 = vector.shape_cast %15 : vector<1x1x16x16xf32> to vector<16x16xf32>
    %cst_21 = arith.constant dense<0.000000e+00> : vector<8x16xf32>
    %17 = tpu.matmul %14, %16, %cst_21 {dimension_numbers = #tpu.dot_dimension_numbers<[1], [1], [0], [0], [0, 0, 1, 0], [], []>} : vector<8x16xf32>, vector<16x16xf32>, vector<8x16xf32> -> vector<8x16xf32>
    %18 = vector.extract_strided_slice %0 {offsets = [0, 1, 0], sizes = [1, 1, 16], strides = [1, 1, 1]} : vector<2x3x16xf32> to vector<1x1x16xf32>
    %19 = vector.shape_cast %18 : vector<1x1x16xf32> to vector<1x16xf32>
    %20 = vector.broadcast %19 : vector<1x16xf32> to vector<8x16xf32>
    %21 = arith.addf %17, %20 : vector<8x16xf32>
    %c0_22 = arith.constant 0 : index
    %c0_23 = arith.constant 0 : index
    %c1_24 = arith.constant 1 : index
    %c0_25 = arith.constant 0 : index
    %22 = vector.load %arg4[%c0_22, %c0_23, %c1_24, %c0_25] : memref<8x2x3x16xf32, #tpu.memory_space<vmem>>, vector<8x1x1x16xf32>
    %23 = vector.shape_cast %22 : vector<8x1x1x16xf32> to vector<8x16xf32>
    %24 = vector.shape_cast %21 : vector<8x16xf32> to vector<8x1x1x16xf32>
    tpu.vector_store %arg4[%c0_22, %c0_23, %c1_24, %c0_25], %24 {strides = array<i32>} : memref<8x2x3x16xf32, #tpu.memory_space<vmem>>, vector<8x1x1x16xf32>,
    %c0_26 = arith.constant 0 : index
    %c0_27 = arith.constant 0 : index
    %c2 = arith.constant 2 : index
    %c0_28 = arith.constant 0 : index
    %25 = vector.load %arg1[%c0_26, %c0_27, %c2, %c0_28] : memref<8x2x3x16xf32, #tpu.memory_space<vmem>>, vector<8x1x1x16xf32>
    %26 = vector.shape_cast %25 : vector<8x1x1x16xf32> to vector<8x16xf32>
    %c0_29 = arith.constant 0 : index
    %c2_30 = arith.constant 2 : index
    %c0_31 = arith.constant 0 : index
    %c0_32 = arith.constant 0 : index
    %27 = vector.load %arg2[%c0_29, %c2_30, %c0_31, %c0_32] : memref<2x3x16x16xf32, #tpu.memory_space<vmem>>, vector<1x1x16x16xf32>
    %28 = vector.shape_cast %27 : vector<1x1x16x16xf32> to vector<16x16xf32>
    %cst_33 = arith.constant dense<0.000000e+00> : vector<8x16xf32>
    %29 = tpu.matmul %26, %28, %cst_33 {dimension_numbers = #tpu.dot_dimension_numbers<[1], [1], [0], [0], [0, 0, 1, 0], [], []>} : vector<8x16xf32>, vector<16x16xf32>, vector<8x16xf32> -> vector<8x16xf32>
    %30 = vector.extract_strided_slice %0 {offsets = [0, 2, 0], sizes = [1, 1, 16], strides = [1, 1, 1]} : vector<2x3x16xf32> to vector<1x1x16xf32>
    %31 = vector.shape_cast %30 : vector<1x1x16xf32> to vector<1x16xf32>
    %32 = vector.broadcast %31 : vector<1x16xf32> to vector<8x16xf32>
    %33 = arith.addf %29, %32 : vector<8x16xf32>
    %c0_34 = arith.constant 0 : index
    %c0_35 = arith.constant 0 : index
    %c2_36 = arith.constant 2 : index
    %c0_37 = arith.constant 0 : index
    %34 = vector.load %arg4[%c0_34, %c0_35, %c2_36, %c0_37] : memref<8x2x3x16xf32, #tpu.memory_space<vmem>>, vector<8x1x1x16xf32>
    %35 = vector.shape_cast %34 : vector<8x1x1x16xf32> to vector<8x16xf32>
    %36 = vector.shape_cast %33 : vector<8x16xf32> to vector<8x1x1x16xf32>
    tpu.vector_store %arg4[%c0_34, %c0_35, %c2_36, %c0_37], %36 {strides = array<i32>} : memref<8x2x3x16xf32, #tpu.memory_space<vmem>>, vector<8x1x1x16xf32>,
    %c0_38 = arith.constant 0 : index
    %c1_39 = arith.constant 1 : index
    %c0_40 = arith.constant 0 : index
    %c0_41 = arith.constant 0 : index
    %37 = vector.load %arg1[%c0_38, %c1_39, %c0_40, %c0_41] : memref<8x2x3x16xf32, #tpu.memory_space<vmem>>, vector<8x1x1x16xf32>
    %38 = vector.shape_cast %37 : vector<8x1x1x16xf32> to vector<8x16xf32>
    %c1_42 = arith.constant 1 : index
    %c0_43 = arith.constant 0 : index
    %c0_44 = arith.constant 0 : index
    %c0_45 = arith.constant 0 : index
    %39 = vector.load %arg2[%c1_42, %c0_43, %c0_44, %c0_45] : memref<2x3x16x16xf32, #tpu.memory_space<vmem>>, vector<1x1x16x16xf32>
    %40 = vector.shape_cast %39 : vector<1x1x16x16xf32> to vector<16x16xf32>
    %cst_46 = arith.constant dense<0.000000e+00> : vector<8x16xf32>
    %41 = tpu.matmul %38, %40, %cst_46 {dimension_numbers = #tpu.dot_dimension_numbers<[1], [1], [0], [0], [0, 0, 1, 0], [], []>} : vector<8x16xf32>, vector<16x16xf32>, vector<8x16xf32> -> vector<8x16xf32>
    %42 = vector.extract_strided_slice %0 {offsets = [1, 0, 0], sizes = [1, 1, 16], strides = [1, 1, 1]} : vector<2x3x16xf32> to vector<1x1x16xf32>
    %43 = vector.shape_cast %42 : vector<1x1x16xf32> to vector<1x16xf32>
    %44 = vector.broadcast %43 : vector<1x16xf32> to vector<8x16xf32>
    %45 = arith.addf %41, %44 : vector<8x16xf32>
    %c0_47 = arith.constant 0 : index
    %c1_48 = arith.constant 1 : index
    %c0_49 = arith.constant 0 : index
    %c0_50 = arith.constant 0 : index
    %46 = vector.load %arg4[%c0_47, %c1_48, %c0_49, %c0_50] : memref<8x2x3x16xf32, #tpu.memory_space<vmem>>, vector<8x1x1x16xf32>
    %47 = vector.shape_cast %46 : vector<8x1x1x16xf32> to vector<8x16xf32>
    %48 = vector.shape_cast %45 : vector<8x16xf32> to vector<8x1x1x16xf32>
    tpu.vector_store %arg4[%c0_47, %c1_48, %c0_49, %c0_50], %48 {strides = array<i32>} : memref<8x2x3x16xf32, #tpu.memory_space<vmem>>, vector<8x1x1x16xf32>,
    %c0_51 = arith.constant 0 : index
    %c1_52 = arith.constant 1 : index
    %c1_53 = arith.constant 1 : index
    %c0_54 = arith.constant 0 : index
    %49 = vector.load %arg1[%c0_51, %c1_52, %c1_53, %c0_54] : memref<8x2x3x16xf32, #tpu.memory_space<vmem>>, vector<8x1x1x16xf32>
    %50 = vector.shape_cast %49 : vector<8x1x1x16xf32> to vector<8x16xf32>
    %c1_55 = arith.constant 1 : index
    %c1_56 = arith.constant 1 : index
    %c0_57 = arith.constant 0 : index
    %c0_58 = arith.constant 0 : index
    %51 = vector.load %arg2[%c1_55, %c1_56, %c0_57, %c0_58] : memref<2x3x16x16xf32, #tpu.memory_space<vmem>>, vector<1x1x16x16xf32>
    %52 = vector.shape_cast %51 : vector<1x1x16x16xf32> to vector<16x16xf32>
    %cst_59 = arith.constant dense<0.000000e+00> : vector<8x16xf32>
    %53 = tpu.matmul %50, %52, %cst_59 {dimension_numbers = #tpu.dot_dimension_numbers<[1], [1], [0], [0], [0, 0, 1, 0], [], []>} : vector<8x16xf32>, vector<16x16xf32>, vector<8x16xf32> -> vector<8x16xf32>
    %54 = vector.extract_strided_slice %0 {offsets = [1, 1, 0], sizes = [1, 1, 16], strides = [1, 1, 1]} : vector<2x3x16xf32> to vector<1x1x16xf32>
    %55 = vector.shape_cast %54 : vector<1x1x16xf32> to vector<1x16xf32>
    %56 = vector.broadcast %55 : vector<1x16xf32> to vector<8x16xf32>
    %57 = arith.addf %53, %56 : vector<8x16xf32>
    %c0_60 = arith.constant 0 : index
    %c1_61 = arith.constant 1 : index
    %c1_62 = arith.constant 1 : index
    %c0_63 = arith.constant 0 : index
    %58 = vector.load %arg4[%c0_60, %c1_61, %c1_62, %c0_63] : memref<8x2x3x16xf32, #tpu.memory_space<vmem>>, vector<8x1x1x16xf32>
    %59 = vector.shape_cast %58 : vector<8x1x1x16xf32> to vector<8x16xf32>
    %60 = vector.shape_cast %57 : vector<8x16xf32> to vector<8x1x1x16xf32>
    tpu.vector_store %arg4[%c0_60, %c1_61, %c1_62, %c0_63], %60 {strides = array<i32>} : memref<8x2x3x16xf32, #tpu.memory_space<vmem>>, vector<8x1x1x16xf32>,
    %c0_64 = arith.constant 0 : index
    %c1_65 = arith.constant 1 : index
    %c2_66 = arith.constant 2 : index
    %c0_67 = arith.constant 0 : index
    %61 = vector.load %arg1[%c0_64, %c1_65, %c2_66, %c0_67] : memref<8x2x3x16xf32, #tpu.memory_space<vmem>>, vector<8x1x1x16xf32>
    %62 = vector.shape_cast %61 : vector<8x1x1x16xf32> to vector<8x16xf32>
    %c1_68 = arith.constant 1 : index
    %c2_69 = arith.constant 2 : index
    %c0_70 = arith.constant 0 : index
    %c0_71 = arith.constant 0 : index
    %63 = vector.load %arg2[%c1_68, %c2_69, %c0_70, %c0_71] : memref<2x3x16x16xf32, #tpu.memory_space<vmem>>, vector<1x1x16x16xf32>
    %64 = vector.shape_cast %63 : vector<1x1x16x16xf32> to vector<16x16xf32>
    %cst_72 = arith.constant dense<0.000000e+00> : vector<8x16xf32>
    %65 = tpu.matmul %62, %64, %cst_72 {dimension_numbers = #tpu.dot_dimension_numbers<[1], [1], [0], [0], [0, 0, 1, 0], [], []>} : vector<8x16xf32>, vector<16x16xf32>, vector<8x16xf32> -> vector<8x16xf32>
    %66 = vector.extract_strided_slice %0 {offsets = [1, 2, 0], sizes = [1, 1, 16], strides = [1, 1, 1]} : vector<2x3x16xf32> to vector<1x1x16xf32>
    %67 = vector.shape_cast %66 : vector<1x1x16xf32> to vector<1x16xf32>
    %68 = vector.broadcast %67 : vector<1x16xf32> to vector<8x16xf32>
    %69 = arith.addf %65, %68 : vector<8x16xf32>
    %c0_73 = arith.constant 0 : index
    %c1_74 = arith.constant 1 : index
    %c2_75 = arith.constant 2 : index
    %c0_76 = arith.constant 0 : index
    %70 = vector.load %arg4[%c0_73, %c1_74, %c2_75, %c0_76] : memref<8x2x3x16xf32, #tpu.memory_space<vmem>>, vector<8x1x1x16xf32>
    %71 = vector.shape_cast %70 : vector<8x1x1x16xf32> to vector<8x16xf32>
    %72 = vector.shape_cast %69 : vector<8x16xf32> to vector<8x1x1x16xf32>
    tpu.vector_store %arg4[%c0_73, %c1_74, %c2_75, %c0_76], %72 {strides = array<i32>} : memref<8x2x3x16xf32, #tpu.memory_space<vmem>>, vector<8x1x1x16xf32>,
    return
  }
  func.func @transform_0(%arg0: i32) -> (i32, i32, i32, i32) {
    %c0_i32 = arith.constant 0 : i32
    %c0_i32_0 = arith.constant 0 : i32
    %c0_i32_1 = arith.constant 0 : i32
    %c0_i32_2 = arith.constant 0 : i32
    return %c0_i32, %arg0, %c0_i32_0, %c0_i32_1 : i32, i32, i32, i32
  }
  func.func @transform_1(%arg0: i32) -> (i32, i32, i32, i32) {
    %c0_i32 = arith.constant 0 : i32
    %c0_i32_0 = arith.constant 0 : i32
    %c0_i32_1 = arith.constant 0 : i32
    %c0_i32_2 = arith.constant 0 : i32
    return %arg0, %c0_i32, %c0_i32_0, %c0_i32_1 : i32, i32, i32, i32
  }
  func.func @transform_2(%arg0: i32) -> (i32, i32, i32) {
    %c0_i32 = arith.constant 0 : i32
    %c0_i32_0 = arith.constant 0 : i32
    %c0_i32_1 = arith.constant 0 : i32
    return %arg0, %c0_i32, %c0_i32_0 : i32, i32, i32
  }
  func.func @transform_3(%arg0: i32) -> (i32, i32, i32, i32) {
    %c0_i32 = arith.constant 0 : i32
    %c0_i32_0 = arith.constant 0 : i32
    %c0_i32_1 = arith.constant 0 : i32
    %c0_i32_2 = arith.constant 0 : i32
    return %c0_i32, %arg0, %c0_i32_0, %c0_i32_1 : i32, i32, i32, i32
  }
}

</mosaic_0001>

<bundles_post_ra>
// kernel: tpu_custom_call.1
= control target key start
LH: loop header
LB: loop body
LE: loop exit
PB: predicated region body
PF: predicated region fallthrough
CT: control target
= control target key end

     0   :  { %s1861_s12 = smov 0   ;;  %s1863_s13 = smov 0   ;;  %s2242_s0 = inlined_call_operand.vmem [shape: f32[8,4,3,16], index: 0, kind: input, shape index: {}]   ;;  %s2243_s1 = inlined_call_operand.vmem [shape: f32[4,3,16,16], index: 1, kind: input, shape index: {}]   ;;  %s2244_s2 = inlined_call_operand.vmem [shape: f32[4,3,16], index: 2, kind: input, shape index: {}]   ;;  %s2245_s3 = inlined_call_operand.vmem [shape: f32[8,4,3,16], index: 3, kind: output, shape index: {}]  }
   0x1   :  { %s1865_s14 = smov 0  }
   0x2 LB: > { %s1877_s15 = sadd.s32 4294967295, %s1835_s14   ;;  %s1880_s16 = sadd.s32 1, %s1835_s14   ;;  %s1835_s14 = sphi %s1865_s14, %s2251_s14   ;;  %s1831_s13 = sphi %s1863_s13, %s2250_s13   ;;  %s1827_s12 = sphi %s1861_s12, %s2249_s12  }
   0x3   : > { %s17_s17 = ssub.s32 %s1835_s14, %s1880_s16  ;;  %s20_s18 = sadd.s32 1, %s1831_s13 }
   0x4   : > { %p18_p0 = scmp.eq.s32.totalorder %s17_s17, 0  ;;  %p27_p1 = scmp.ne.s32.totalorder %s1831_s13, %s1827_s12 }
   0x5   : > { %p28_p2 = scmp.eq.s32.totalorder %s1835_s14, 0  ;;  %p109_p3 = scmp.eq.s32.totalorder %s1877_s15, 1 }
   0x6   : > { %s1890_s19 = scalar_select %p18_p0, %s1831_s13, %s20_s18  }
   0x7   : > { %p29_p4 = por %p28_p2, %p27_p1  ;;  %p1892_p5 = por %p109_p3, %p27_p1 }
   0x8   : > { %p1606_p6 = scmp.ge.s32.totalorder %s1835_s14, 2 }
   0xa   : > { %131 = sbr.rel (%p1606_p6) target bundleno = 25 (0x19), region = 16 }
  0x11   : > { %134 = sbr.rel (!%p29_p4) target bundleno = 25 (0x19), region = 20  ;;  %s136_s21 = sand.u32 (%p29_p4), 1, %s1831_s13  }
  0x12   : > { %s1698_s22 = sshll.u32 (%p29_p4), %s1835_s14, 3  ;;  %s1607_s23 = sshll.u32 (%p29_p4), %s136_s21, 6 }
  0x13   : > { %s141_s26 = scalar_lea.vmem (%p29_p4), %s2242_s0, %s1698_s22  ;;  %s138_s27 = scalar_lea.vmem (%p29_p4), [#allocation2], %s1607_s23 }
  0x14   : > { %v157_v0 = vld [vmem:[%s141_s26] sm:$0xff] (%p29_p4)   ;;  %v161_v1 = vld [vmem:[%s141_s26 + $0x10] sm:$0xff] (%p29_p4)  }
  0x15   : > { %v165_v2 = vld [vmem:[%s141_s26 + $0x20] sm:$0xff] (%p29_p4)   ;;  %158 = vst [vmem:[%s138_s27] sm:$0xff] (%p29_p4), %v157_v0   ;;  %162 = vst [vmem:[%s138_s27 + $0x8] sm:$0xff] (%p29_p4), %v161_v1   ;;  %v169_v3 = vld [vmem:[%s141_s26 + $0x30] sm:$0xff] (%p29_p4)  }
  0x16   : > { %166 = vst [vmem:[%s138_s27 + $0x10] sm:$0xff] (%p29_p4), %v165_v2   ;;  %v173_v4 = vld [vmem:[%s141_s26 + $0x40] sm:$0xff] (%p29_p4)   ;;  %v177_v5 = vld [vmem:[%s141_s26 + $0x50] sm:$0xff] (%p29_p4)   ;;  %170 = vst [vmem:[%s138_s27 + $0x18] sm:$0xff] (%p29_p4), %v169_v3  }
  0x17   : > { %174 = vst [vmem:[%s138_s27 + $0x20] sm:$0xff] (%p29_p4), %v173_v4   ;;  %178 = vst [vmem:[%s138_s27 + $0x28] sm:$0xff] (%p29_p4), %v177_v5   ;;  %v181_v6 = vld [vmem:[%s141_s26 + $0x60] sm:$0xff] (%p29_p4)   ;;  %v185_v7 = vld [vmem:[%s141_s26 + $0x70] sm:$0xff] (%p29_p4)  }
  0x18   : > { %182 = vst [vmem:[%s138_s27 + $0x30] sm:$0xff] %v181_v6   ;;  %186 = vst [vmem:[%s138_s27 + $0x38] sm:$0xff] %v185_v7  }
  0x19 PF: > { %p1610_p7 = scmp.ge.s32.totalorder %s1835_s14, 1  ;;  %p261_p8 = scmp.lt.s32.totalorder %s1835_s14, 3 }
  0x1b   : > { %p262_p9 = pnand %p1610_p7, %p261_p8 }
  0x1c   : > { %s1613_s28 = sshll.u32 (!%p262_p9), %s1877_s15, 1  ;;  %s268_s29 = sand.u32 (!%p262_p9), 1, %s1827_s12   ;;  %v1837_v8 = vmov (!%p262_p9), 0.0|0.0   ;;  %vm361_vm0 = vcmask (!%p262_p9), 130048   ;;  %vm1838_vm1 = vmmov (!%p262_p9), 0   ;;  %v1839_v9 = vmov (!%p262_p9), 0.0  }
  0x1d   : > { %265 = sbr.rel (%p262_p9) target bundleno = 303 (0x12f), region = 69  ;;  %1760 = vmatprep.subr.bf16.mxu0 (!%p262_p9), %v1837_v8  ;;  %1764 = vmatprep.subr.bf16.mxu1 (!%p262_p9), %v1837_v8  ;;  %p303_p10 = scmp.lt.s32.totalorder (!%p262_p9), %s1613_s28, 3  ;;  %vm341_vm2 = vcmask (!%p262_p9), 1041409   ;;  %vm344_vm3 = vcmask (!%p262_p9), 1042434   ;;  %vm347_vm4 = vcmask (!%p262_p9), 1043459   ;;  %vm350_vm5 = vcmask (!%p262_p9), 1044484   ;;  %vm1935_vm7 = vmpackc.low (!%p262_p9), %vm361_vm0, %vm361_vm0 }
  0x1e   : > { %s1908_s30 = sshll.u32 (!%p262_p9), %s268_s29, 6  ;;  %1722 = vmatprep.mubr.msk.f32.mxu0 (!%p262_p9), %vm1838_vm1, %v1839_v9  ;;  %1729 = vmatprep.mubr.msk.f32.mxu1 (!%p262_p9), %vm1838_vm1, %v1839_v9  ;;  %vm353_vm6 = vcmask (!%p262_p9), 1045509   ;;  %vm356_vm8 = vcmask (!%p262_p9), 1046534   ;;  %vm359_vm9 = vcmask (!%p262_p9), 1047559   ;;  %vm498_vm10 = vcmask (!%p262_p9), 122880  }
  0x1f   : > { %s1917_s4 = scalar_lea.vmem (!%p262_p9), [#allocation2], %s1908_s30  ;;  %s2088_s14 = scalar_lea.vmem (!%p262_p9), [#allocation3], %s1908_s30 }
  0x20   : > { %v318_v10 = vld [vmem:[%s1917_s4] sm:$0x1] (!%p262_p9)  ;;  %v319_v11 = vld [vmem:[%s1917_s4 + $0x8] sm:$0x1] (!%p262_p9)  ;;  %v320_v12 = vld [vmem:[%s1917_s4 + $0x10] sm:$0x1] (!%p262_p9) }
  0x21   : > { %v321_v13 = vld [vmem:[%s1917_s4 + $0x18] sm:$0x1] (!%p262_p9)  ;;  %v322_v14 = vld [vmem:[%s1917_s4 + $0x20] sm:$0x1] (!%p262_p9)  ;;  %v323_v15 = vld [vmem:[%s1917_s4 + $0x28] sm:$0x1] (!%p262_p9) }
  0x22   : > { %v324_v16 = vld [vmem:[%s1917_s4 + $0x30] sm:$0x1] (!%p262_p9)  ;;  %v340_v17 = vrot.slane (!%p262_p9), %v319_v11, 7  ;;  %v325_v18 = vld [vmem:[%s1917_s4 + $0x38] sm:$0x1] (!%p262_p9)  ;;  %v343_v19 = vrot.slane (!%p262_p9), %v320_v12, 6 }
  0x23   : > { %v346_v20 = vrot.slane (!%p262_p9), %v321_v13, 5  ;;  %v349_v21 = vrot.slane (!%p262_p9), %v322_v14, 4  ;;  %v352_v24 = vrot.slane (!%p262_p9), %v323_v15, 3  ;;  %v507_v25 = vld [vmem:[%s1917_s4 + $0x1] sm:$0x1] (!%p262_p9)  ;;  %v355_v31 = vrot.slane (!%p262_p9), %v324_v16, 2 }
  0x24   : > { %s2253_s28 = smov (!%p303_p10, %s1613_s28), 3  ;;  %v342_v23 = vsel %vm341_vm2, %v340_v17, %v318_v10  ;;  %v508_v26 = vld [vmem:[%s1917_s4 + $0x9] sm:$0x1]  ;;  %v358_v36 = vrot.slane %v325_v18, 1  ;;  %v509_v37 = vld [vmem:[%s1917_s4 + $0x11] sm:$0x1] }
  0x25   : > { %s1784_s5 = smul.u32 48, %s2253_s28  ;;  %v345_v30 = vsel %vm344_vm3, %v343_v19, %v342_v23  ;;  %v530_v32 = vrot.slane %v508_v26, 7  ;;  %v510_v38 = vld [vmem:[%s1917_s4 + $0x19] sm:$0x1]  ;;  %v511_v41 = vld [vmem:[%s1917_s4 + $0x21] sm:$0x1] }
  0x26   : > { %v348_v35 = vsel %vm347_vm4, %v346_v20, %v345_v30  ;;  %v512_v42 = vld [vmem:[%s1917_s4 + $0x29] sm:$0x1]  ;;  %v513_v43 = vld [vmem:[%s1917_s4 + $0x31] sm:$0x1]  ;;  %v514_v46 = vld [vmem:[%s1917_s4 + $0x39] sm:$0x1] }
  0x27   : > { %s1931_s8 = scalar_lea.vmem %s2243_s1, %s1784_s5  ;;  %v351_v40 = vsel %vm350_vm5, %v349_v21, %v348_v35  ;;  %v531_v44 = vsel %vm341_vm2, %v530_v32, %v507_v25  ;;  %v532_v47 = vrot.slane %v509_v37, 6  ;;  %v534_v48 = vrot.slane %v510_v38, 5  ;;  %v688_v59 = vld [vmem:[%s1917_s4 + $0x2] sm:$0x1]  ;;  %v689_v60 = vld [vmem:[%s1917_s4 + $0xa] sm:$0x1] }
  0x28   : > { %v326_v27 = vld [vmem:[%s1931_s8] sm:$0xff]  ;;  %v327_v28 = vld [vmem:[%s1931_s8 + $0x8] sm:$0xff]  ;;  %v1620_v29 = vld [vmem:[%s1931_s8 + $0x10] sm:$0xff]  ;;  %v354_v45 = vsel %vm353_vm6, %v352_v24, %v351_v40  ;;  %v536_v49 = vrot.slane %v511_v41, 4  ;;  %v538_v52 = vrot.slane %v512_v42, 3  ;;  %v540_v53 = vrot.slane %v513_v43, 2 }
  0x29   : > { %v1761_v33 = vpack.c.bf16 %v327_v28, %v326_v27  ;;  %v1621_v34 = vld [vmem:[%s1931_s8 + $0x18] sm:$0xff]  ;;  %v1625_v50 = vld [vmem:[%s1931_s8 + $0x20] sm:$0xff]  ;;  %v357_v51 = vsel %vm356_vm8, %v355_v31, %v354_v45  ;;  %v542_v54 = vrot.slane %v514_v46, 1  ;;  %v1626_v55 = vld [vmem:[%s1931_s8 + $0x28] sm:$0xff]  ;;  %v533_v58 = vsel %vm344_vm3, %v532_v47, %v531_v44  ;;  %s1616_s9 = sshll.u32 %s2253_s28, 2  ;;  %s1699_s17 = sshll.u32 (%p1892_p5), %s1877_s15, 3 }
  0x2a   : > { %v1765_v39 = vpack.c.bf16 %v1621_v34, %v1620_v29  ;;  %v1638_v56 = vld [vmem:[%s1931_s8 + $0x30] sm:$0xff]  ;;  %v1639_v57 = vld [vmem:[%s1931_s8 + $0x38] sm:$0xff]  ;;  %v360_v62 = vsel %vm359_vm9, %v358_v36, %v357_v51  ;;  %v535_v63 = vsel %vm347_vm4, %v534_v48, %v533_v58  ;;  %v1769_v0 = vpack.c.bf16 %v1626_v55, %v1625_v50  ;;  %v692_v2 = vld [vmem:[%s1917_s4 + $0x22] sm:$0x1]  ;;  %s313_s12 = scalar_lea.vmem %s2244_s2, %s1616_s9  ;;  %s1423_s22 = scalar_lea.vmem (%p1892_p5), %s2245_s3, %s1699_s17 }
  0x2b   : > { %1763 = vmatpush3.bf16.xpose.msk.msra.mxu0 %vm1935_vm7, %v1761_v33  ;;  %v690_v61 = vld [vmem:[%s1917_s4 + $0x12] sm:$0x1]  ;;  %v691_v1 = vld [vmem:[%s1917_s4 + $0x1a] sm:$0x1]  ;;  %v693_v3 = vld [vmem:[%s1917_s4 + $0x2a] sm:$0x1]  ;;  %v537_v4 = vsel %vm350_vm5, %v536_v49, %v535_v63  ;;  %v1773_v5 = vpack.c.bf16 %v1639_v57, %v1638_v56 }
  0x2c   : > { %1767 = vmatpush3.bf16.xpose.msk.msra.mxu1 %vm1935_vm7, %v1765_v39  ;;  %1768 = vmatprep.subr.bf16.mxu0 %v1837_v8  ;;  %v694_v6 = vld [vmem:[%s1917_s4 + $0x32] sm:$0x1]  ;;  %v695_v7 = vld [vmem:[%s1917_s4 + $0x3a] sm:$0x1]  ;;  %v711_v10 = vrot.slane %v689_v60, 7  ;;  %v713_v11 = vrot.slane %v690_v61, 6  ;;  %v539_v12 = vsel %vm353_vm6, %v538_v52, %v537_v4 }
  0x2d   : > { %1772 = vmatprep.subr.bf16.mxu1 %v1837_v8  ;;  %v715_v13 = vrot.slane %v691_v1, 5  ;;  %v717_v14 = vrot.slane %v692_v2, 4  ;;  %v719_v15 = vrot.slane %v693_v3, 3  ;;  %v1630_v16 = vld [vmem:[%s1917_s4 + $0x4] sm:$0x1]  ;;  %v541_v17 = vsel %vm356_vm8, %v540_v53, %v539_v12  ;;  %v1660_v39 = vld [vmem:[%s1931_s8 + $0x48] sm:$0xff] }
  0x2e   : > { %v712_v18 = vsel %vm341_vm2, %v711_v10, %v688_v59  ;;  %v721_v19 = vrot.slane %v694_v6, 2  ;;  %v723_v20 = vrot.slane %v695_v7, 1  ;;  %v1631_v21 = vld [vmem:[%s1917_s4 + $0xc] sm:$0x1]  ;;  %v1632_v23 = vld [vmem:[%s1917_s4 + $0x14] sm:$0x1]  ;;  %v543_v24 = vsel %vm359_vm9, %v542_v54, %v541_v17 }
  0x2f   : > { %v714_v25 = vsel %vm344_vm3, %v713_v11, %v712_v18  ;;  %v1633_v26 = vld [vmem:[%s1917_s4 + $0x1c] sm:$0x1]  ;;  %v1634_v27 = vld [vmem:[%s1917_s4 + $0x24] sm:$0x1]  ;;  %v1635_v28 = vld [vmem:[%s1917_s4 + $0x2c] sm:$0x1] }
  0x30   : > { %v1659_v29 = vld [vmem:[%s1931_s8 + $0x40] sm:$0xff]  ;;  %v716_v30 = vsel %vm347_vm4, %v715_v13, %v714_v25  ;;  %v1636_v31 = vld [vmem:[%s1917_s4 + $0x34] sm:$0x1]  ;;  %v1637_v32 = vld [vmem:[%s1917_s4 + $0x3c] sm:$0x1]  ;;  %v893_v33 = vrot.slane %v1631_v21, 7 }
  0x31   : > { %v895_v34 = vrot.slane %v1632_v23, 6  ;;  %v718_v35 = vsel %vm350_vm5, %v717_v14, %v716_v30  ;;  %v897_v36 = vrot.slane %v1633_v26, 5  ;;  %v899_v37 = vrot.slane %v1634_v27, 4  ;;  %v1680_v40 = vld [vmem:[%s1931_s8 + $0x50] sm:$0xff]  ;;  %v1681_v41 = vld [vmem:[%s1931_s8 + $0x58] sm:$0xff] }
  0x32   : > { %1723 = vmatmul.mubr.msk.f32.vlgmr.msra.gmra.mrb[0].mxu0 %vm361_vm0, %v360_v62  ;;  %v901_v38 = vrot.slane %v1635_v28, 3  ;;  %v720_v42 = vsel %vm353_vm6, %v719_v15, %v718_v35  ;;  %v894_v43 = vsel %vm341_vm2, %v893_v33, %v1630_v16  ;;  %v903_v44 = vrot.slane %v1636_v31, 2  ;;  %v1651_v46 = vld [vmem:[%s1917_s4 + $0x5] sm:$0x1]  ;;  %v1652_v47 = vld [vmem:[%s1917_s4 + $0xd] sm:$0x1] }
  0x33   : > { %1730 = vmatmul.mubr.msk.f32.vlgmr.msra.gmra.mrb[0].mxu1 %vm361_vm0, %v543_v24  ;;  %1771 = vmatpush3.bf16.xpose.msk.msra.mxu0 %vm1935_vm7, %v1769_v0  ;;  %v905_v45 = vrot.slane %v1637_v32, 1  ;;  %v722_v48 = vsel %vm356_vm8, %v721_v19, %v720_v42  ;;  %v896_v49 = vsel %vm344_vm3, %v895_v34, %v894_v43  ;;  %v1653_v50 = vld [vmem:[%s1917_s4 + $0x15] sm:$0x1]  ;;  %v1654_v51 = vld [vmem:[%s1917_s4 + $0x1d] sm:$0x1]  ;;  %v1777_v55 = vpack.c.bf16 %v1660_v39, %v1659_v29 }
  0x34   : > { %1775 = vmatpush3.bf16.xpose.msk.msra.mxu1 %vm1935_vm7, %v1773_v5  ;;  %1736 = vmatprep.mubr.msk.f32.mxu0 %vm1838_vm1, %v1839_v9  ;;  %v1655_v52 = vld [vmem:[%s1917_s4 + $0x25] sm:$0x1]  ;;  %v724_v53 = vsel %vm359_vm9, %v723_v20, %v722_v48  ;;  %v898_v54 = vsel %vm347_vm4, %v897_v36, %v896_v49  ;;  %v1781_v56 = vpack.c.bf16 %v1681_v41, %v1680_v40  ;;  %v1656_v57 = vld [vmem:[%s1917_s4 + $0x2d] sm:$0x1]  ;;  %v1657_v58 = vld [vmem:[%s1917_s4 + $0x35] sm:$0x1]  ;;  %v328_v36 = vlaneseq }
  0x35   : > { %1743 = vmatprep.mubr.msk.f32.mxu1 %vm1838_vm1, %v1839_v9  ;;  %1776 = vmatprep.subr.bf16.mxu0 %v1837_v8  ;;  %v1658_v59 = vld [vmem:[%s1917_s4 + $0x3d] sm:$0x1]  ;;  %v900_v60 = vsel %vm350_vm5, %v899_v37, %v898_v54  ;;  %v1075_v61 = vrot.slane %v1652_v47, 7  ;;  %v1077_v62 = vrot.slane %v1653_v50, 6  ;;  %v1672_v63 = vld [vmem:[%s1917_s4 + $0x6] sm:$0x1] }
  0x36   : > { %1780 = vmatprep.subr.bf16.mxu1 %v1837_v8  ;;  %v1079_v8 = vrot.slane %v1654_v51, 5  ;;  %v902_v0 = vsel %vm353_vm6, %v901_v38, %v900_v60  ;;  %v1081_v1 = vrot.slane %v1655_v52, 4  ;;  %v1083_v2 = vrot.slane %v1656_v57, 3  ;;  %v1673_v4 = vld [vmem:[%s1917_s4 + $0xe] sm:$0x1] }
  0x37   : > { %v1085_v3 = vrot.slane %v1657_v58, 2  ;;  %v904_v5 = vsel %vm356_vm8, %v903_v44, %v902_v0  ;;  %v1076_v6 = vsel %vm341_vm2, %v1075_v61, %v1651_v46  ;;  %v1087_v7 = vrot.slane %v1658_v59, 1  ;;  %v1674_v10 = vld [vmem:[%s1917_s4 + $0x16] sm:$0x1]  ;;  %v1675_v11 = vld [vmem:[%s1917_s4 + $0x1e] sm:$0x1] }
  0x38   : > { %v1256_v12 = vrot.slane %v1673_v4, 7  ;;  %v906_v13 = vsel %vm359_vm9, %v905_v45, %v904_v5  ;;  %v1078_v14 = vsel %vm344_vm3, %v1077_v62, %v1076_v6  ;;  %v1676_v15 = vld [vmem:[%s1917_s4 + $0x26] sm:$0x1]  ;;  %v1677_v16 = vld [vmem:[%s1917_s4 + $0x2e] sm:$0x1]  ;;  %v1258_v21 = vrot.slane %v1674_v10, 6 }
  0x39   : > { %v1678_v17 = vld [vmem:[%s1917_s4 + $0x36] sm:$0x1]  ;;  %v1080_v18 = vsel %vm347_vm4, %v1079_v8, %v1078_v14  ;;  %v1679_v19 = vld [vmem:[%s1917_s4 + $0x3e] sm:$0x1]  ;;  %v1260_v23 = vrot.slane %v1675_v11, 5  ;;  %v1262_v25 = vrot.slane %v1676_v15, 4 }
  0x3a   : > { %1737 = vmatmul.mubr.msk.f32.vlgmr.msra.gmra.mrb[2].mxu0 %vm361_vm0, %v724_v53  ;;  %v1257_v20 = vsel %vm341_vm2, %v1256_v12, %v1672_v63  ;;  %v1082_v24 = vsel %vm350_vm5, %v1081_v1, %v1080_v18  ;;  %v1264_v26 = vrot.slane %v1677_v16, 3  ;;  %v1266_v29 = vrot.slane %v1678_v17, 2  ;;  %v316_v41 = vld [vmem:[%s313_s12] sm:$0x7] }
  0x3b   : > { %1779 = vmatpush3.bf16.xpose.msk.msra.mxu0 %vm1935_vm7, %v1777_v55  ;;  %1750 = vmatprep.mubr.msk.f32.mxu0 %vm1838_vm1, %v1839_v9  ;;  %v1084_v27 = vsel %vm353_vm6, %v1083_v2, %v1082_v24  ;;  %v1259_v28 = vsel %vm344_vm3, %v1258_v21, %v1257_v20  ;;  %v1268_v32 = vrot.slane %v1679_v19, 1  ;;  %v2064_v37 = vshrl.u32 %v328_v36, 7 }
  0x3c   : > { %1744 = vmatmul.mubr.msk.f32.vlgmr.msra.gmra.mrb[2].mxu1 %vm361_vm0, %v906_v13  ;;  %v1086_v30 = vsel %vm356_vm8, %v1085_v3, %v1084_v27  ;;  %v1261_v31 = vsel %vm347_vm4, %v1260_v23, %v1259_v28  ;;  %v1840_v38 = vmov 1966171168  }
  0x3d   : > { %1783 = vmatpush3.bf16.xpose.msk.msra.mxu1 %vm1935_vm7, %v1781_v56  ;;  %1757 = vmatprep.mubr.msk.f32.mxu1 %vm1838_vm1, %v1839_v9  ;;  %v1088_v22 = vsel %vm359_vm9, %v1087_v7, %v1086_v30  ;;  %v1263_v33 = vsel %vm350_vm5, %v1262_v25, %v1261_v31  ;;  %v443_v39 = vunpack.c.l.s4 %v1840_v38  ;;  %v330_v40 = vsub.s32 0, %v2064_v37  ;;  %v317_v56 = vld [vmem:[%s313_s12 + $0x4] sm:$0x7] }
  0x3e   : > { %v1265_v9 = vsel %vm353_vm6, %v1264_v26, %v1263_v33  ;;  %v520_v42 = vsub.s32 1, %v2064_v37  ;;  %v701_v51 = vsub.s32 2, %v2064_v37 }
  0x3f   : > { %v1267_v34 = vsel %vm356_vm8, %v1266_v29, %v1265_v9  ;;  %v444_v43 = vunpack.c.0.s8 %v443_v39  ;;  %v331_v44 = vrot.slane %v316_v41, %v330_v40  ;;  %v884_v1 = vrot.slane %v317_v56, %v330_v40 }
  0x40   : > { %v1269_v35 = vsel %vm359_vm9, %v1268_v32, %v1267_v34  ;;  %v521_v45 = vrot.slane %v316_v41, %v520_v42  ;;  %v702_v62 = vrot.slane %v316_v41, %v701_v51  ;;  %v1066_v29 = vrot.slane %v317_v56, %v520_v42 }
  0x41   : > { %v2074_v46 = vsub.s32 %v444_v43, %v2064_v37  ;;  %v1247_v9 = vrot.slane %v317_v56, %v701_v51 }
  0x42   : > { %1751 = vmatmul.mubr.msk.f32.vlgmr.msra.gmra.mrb[4].mxu0 %vm361_vm0, %v1088_v22 }
  0x44   : > { %1758 = vmatmul.mubr.msk.f32.vlgmr.msra.gmra.mrb[4].mxu1 %vm361_vm0, %v1269_v35 }
 0x105   : > { %v436_v47 = vpop.f32.mrb[0].mxu0 }
 0x106   : > { %v437_v48 = vadd.f32 %v436_v47, %v331_v44  ;;  %v618_v49 = vpop.f32.mrb[0].mxu1  ;;  %v1724_v50 = vpop.f32.mrb[1].mxu0 }
 0x107   : > { %v619_v52 = vadd.f32 %v618_v49, %v521_v45  ;;  %v1731_v53 = vpop.f32.mrb[1].mxu1 }
 0x108   : > { %v441_v54 = vcombine.high %v437_v48, %v437_v48  ;;  %v448_v55 = vrot.slane %v437_v48, %v2074_v46 }
 0x109   : > { %v623_v57 = vcombine.high %v619_v52, %v619_v52  ;;  %v630_v58 = vrot.slane %v619_v52, %v2074_v46 }
 0x10a   : > { %v455_v59 = vrot.slane %v441_v54, %v2074_v46  ;;  %v456_v60 = vcombine.high %v448_v55, %v448_v55  ;;  %v464_v61 = vrot.slane %v448_v55, %v2074_v46 }
 0x10b   : > { %v637_v8 = vrot.slane %v623_v57, %v2074_v46  ;;  %v638_v63 = vcombine.high %v630_v58, %v630_v58  ;;  %v646_v0 = vrot.slane %v630_v58, %v2074_v46 }
 0x10c   : > { %v457_v2 = vcombine.high %v455_v59, %v455_v59  ;;  %v471_v3 = vrot.slane %v455_v59, %v2074_v46  ;;  %v478_v4 = vrot.slane %v456_v60, %v2074_v46  ;;  %v486_v5 = vcombine.high %v464_v61, %v464_v61  ;;  %499 = vst.msk [vmem:[%s2088_s14] sm:$0x1] %vm498_vm10, %v464_v61 }
 0x10d   : > { %v639_v6 = vcombine.high %v637_v8, %v637_v8  ;;  %v653_v7 = vrot.slane %v637_v8, %v2074_v46  ;;  %v660_v10 = vrot.slane %v638_v63, %v2074_v46  ;;  %v668_v11 = vcombine.high %v646_v0, %v646_v0  ;;  %680 = vst.msk [vmem:[%s2088_s14 + $0x1] sm:$0x1] %vm498_vm10, %v646_v0  ;;  %v799_v12 = vpop.f32.mrb[2].mxu0 }
 0x10e   : > { %v485_v13 = vrot.slane %v457_v2, %v2074_v46  ;;  %v487_v14 = vcombine.high %v471_v3, %v471_v3  ;;  %v488_v15 = vcombine.high %v478_v4, %v478_v4  ;;  %500 = vst.msk [vmem:[%s2088_s14 + $0x8] sm:$0x1] %vm498_vm10, %v478_v4  ;;  %501 = vst.msk [vmem:[%s2088_s14 + $0x10] sm:$0x1] %vm498_vm10, %v486_v5  ;;  %v1738_v17 = vpop.f32.mrb[3].mxu0 }
 0x10f   : > { %503 = vst.msk [vmem:[%s2088_s14 + $0x20] sm:$0x1] %vm498_vm10, %v471_v3  ;;  %v800_v16 = vadd.f32 %v799_v12, %v702_v62  ;;  %v667_v18 = vrot.slane %v639_v6, %v2074_v46  ;;  %v669_v19 = vcombine.high %v653_v7, %v653_v7  ;;  %v670_v20 = vcombine.high %v660_v10, %v660_v10  ;;  %v981_v21 = vpop.f32.mrb[2].mxu1 }
 0x110   : > { %681 = vst.msk [vmem:[%s2088_s14 + $0x9] sm:$0x1] %vm498_vm10, %v660_v10  ;;  %682 = vst.msk [vmem:[%s2088_s14 + $0x11] sm:$0x1] %vm498_vm10, %v668_v11  ;;  %v489_v23 = vcombine.high %v485_v13, %v485_v13  ;;  %v982_v26 = vadd.f32 %v981_v21, %v884_v1  ;;  %v1745_v27 = vpop.f32.mrb[3].mxu1 }
 0x111   : > { %684 = vst.msk [vmem:[%s2088_s14 + $0x21] sm:$0x1] %vm498_vm10, %v653_v7  ;;  %502 = vst.msk [vmem:[%s2088_s14 + $0x18] sm:$0x1] %vm498_vm10, %v488_v15  ;;  %v804_v24 = vcombine.high %v800_v16, %v800_v16  ;;  %v811_v25 = vrot.slane %v800_v16, %v2074_v46  ;;  %v671_v28 = vcombine.high %v667_v18, %v667_v18 }
 0x112   : > { %504 = vst.msk [vmem:[%s2088_s14 + $0x28] sm:$0x1] %vm498_vm10, %v485_v13  ;;  %505 = vst.msk [vmem:[%s2088_s14 + $0x30] sm:$0x1] %vm498_vm10, %v487_v14  ;;  %v986_v22 = vcombine.high %v982_v26, %v982_v26  ;;  %v993_v33 = vrot.slane %v982_v26, %v2074_v46 }
 0x113   : > { %683 = vst.msk [vmem:[%s2088_s14 + $0x19] sm:$0x1] %vm498_vm10, %v670_v20  ;;  %685 = vst.msk [vmem:[%s2088_s14 + $0x29] sm:$0x1] %vm498_vm10, %v667_v18  ;;  %v818_v30 = vrot.slane %v804_v24, %v2074_v46  ;;  %v819_v31 = vcombine.high %v811_v25, %v811_v25  ;;  %v827_v32 = vrot.slane %v811_v25, %v2074_v46 }
 0x114   : > { %686 = vst.msk [vmem:[%s2088_s14 + $0x31] sm:$0x1] %vm498_vm10, %v669_v19  ;;  %506 = vst.msk [vmem:[%s2088_s14 + $0x38] sm:$0x1] %vm498_vm10, %v489_v23  ;;  %v1000_v39 = vrot.slane %v986_v22, %v2074_v46  ;;  %v1001_v40 = vcombine.high %v993_v33, %v993_v33  ;;  %v1009_v41 = vrot.slane %v993_v33, %v2074_v46 }
 0x115   : > { %687 = vst.msk [vmem:[%s2088_s14 + $0x39] sm:$0x1] %vm498_vm10, %v671_v28  ;;  %v820_v34 = vcombine.high %v818_v30, %v818_v30  ;;  %v834_v35 = vrot.slane %v818_v30, %v2074_v46  ;;  %v841_v36 = vrot.slane %v819_v31, %v2074_v46  ;;  %v849_v38 = vcombine.high %v827_v32, %v827_v32  ;;  %v1163_v42 = vpop.f32.mrb[4].mxu0 }
 0x116   : > { %861 = vst.msk [vmem:[%s2088_s14 + $0x2] sm:$0x1] %vm498_vm10, %v827_v32  ;;  %v1164_v45 = vadd.f32 %v1163_v42, %v1066_v29  ;;  %v1752_v47 = vpop.f32.mrb[5].mxu0  ;;  %v1002_v48 = vcombine.high %v1000_v39, %v1000_v39  ;;  %v1016_v49 = vrot.slane %v1000_v39, %v2074_v46  ;;  %v1023_v50 = vrot.slane %v1001_v40, %v2074_v46 }
 0x117   : > { %v848_v37 = vrot.slane %v820_v34, %v2074_v46  ;;  %v850_v43 = vcombine.high %v834_v35, %v834_v35  ;;  %v851_v44 = vcombine.high %v841_v36, %v841_v36  ;;  %862 = vst.msk [vmem:[%s2088_s14 + $0xa] sm:$0x1] %vm498_vm10, %v841_v36  ;;  %863 = vst.msk [vmem:[%s2088_s14 + $0x12] sm:$0x1] %vm498_vm10, %v849_v38  ;;  %v1344_v52 = vpop.f32.mrb[4].mxu1 }
 0x118   : > { %865 = vst.msk [vmem:[%s2088_s14 + $0x22] sm:$0x1] %vm498_vm10, %v834_v35  ;;  %v1031_v51 = vcombine.high %v1009_v41, %v1009_v41  ;;  %1643 = vst.msk [vmem:[%s2088_s14 + $0x4] sm:$0x1] %vm498_vm10, %v1009_v41  ;;  %v1168_v54 = vcombine.high %v1164_v45, %v1164_v45  ;;  %v1175_v55 = vrot.slane %v1164_v45, %v2074_v46  ;;  %v1759_v57 = vpop.f32.mrb[5].mxu1 }
 0x119   : > { %v852_v53 = vcombine.high %v848_v37, %v848_v37  ;;  %864 = vst.msk [vmem:[%s2088_s14 + $0x1a] sm:$0x1] %vm498_vm10, %v851_v44  ;;  %866 = vst.msk [vmem:[%s2088_s14 + $0x2a] sm:$0x1] %vm498_vm10, %v848_v37  ;;  %v1345_v56 = vadd.f32 %v1344_v52, %v1247_v9  ;;  %v1030_v58 = vrot.slane %v1002_v48, %v2074_v46 }
 0x11a   : > { %867 = vst.msk [vmem:[%s2088_s14 + $0x32] sm:$0x1] %vm498_vm10, %v850_v43  ;;  %v1032_v59 = vcombine.high %v1016_v49, %v1016_v49  ;;  %v1033_v60 = vcombine.high %v1023_v50, %v1023_v50  ;;  %1644 = vst.msk [vmem:[%s2088_s14 + $0xc] sm:$0x1] %vm498_vm10, %v1023_v50  ;;  %v1182_v61 = vrot.slane %v1168_v54, %v2074_v46 }
 0x11b   : > { %1645 = vst.msk [vmem:[%s2088_s14 + $0x14] sm:$0x1] %vm498_vm10, %v1031_v51  ;;  %1647 = vst.msk [vmem:[%s2088_s14 + $0x24] sm:$0x1] %vm498_vm10, %v1016_v49  ;;  %v1183_v62 = vcombine.high %v1175_v55, %v1175_v55  ;;  %v1191_v8 = vrot.slane %v1175_v55, %v2074_v46  ;;  %v1349_v63 = vcombine.high %v1345_v56, %v1345_v56 }
 0x11c   : > { %868 = vst.msk [vmem:[%s2088_s14 + $0x3a] sm:$0x1] %vm498_vm10, %v852_v53  ;;  %v1034_v0 = vcombine.high %v1030_v58, %v1030_v58  ;;  %1646 = vst.msk [vmem:[%s2088_s14 + $0x1c] sm:$0x1] %vm498_vm10, %v1033_v60  ;;  %v1356_v1 = vrot.slane %v1345_v56, %v2074_v46  ;;  %v1184_v2 = vcombine.high %v1182_v61, %v1182_v61 }
 0x11d   : > { %1648 = vst.msk [vmem:[%s2088_s14 + $0x2c] sm:$0x1] %vm498_vm10, %v1030_v58  ;;  %1649 = vst.msk [vmem:[%s2088_s14 + $0x34] sm:$0x1] %vm498_vm10, %v1032_v59  ;;  %v1198_v3 = vrot.slane %v1182_v61, %v2074_v46  ;;  %v1205_v4 = vrot.slane %v1183_v62, %v2074_v46  ;;  %v1213_v5 = vcombine.high %v1191_v8, %v1191_v8 }
 0x11e   : > { %1664 = vst.msk [vmem:[%s2088_s14 + $0x5] sm:$0x1] %vm498_vm10, %v1191_v8  ;;  %1650 = vst.msk [vmem:[%s2088_s14 + $0x3c] sm:$0x1] %vm498_vm10, %v1034_v0  ;;  %v1363_v6 = vrot.slane %v1349_v63, %v2074_v46  ;;  %v1364_v7 = vcombine.high %v1356_v1, %v1356_v1  ;;  %v1372_v10 = vrot.slane %v1356_v1, %v2074_v46 }
 0x11f   : > { %v1212_v11 = vrot.slane %v1184_v2, %v2074_v46  ;;  %v1214_v12 = vcombine.high %v1198_v3, %v1198_v3  ;;  %v1215_v13 = vcombine.high %v1205_v4, %v1205_v4  ;;  %1665 = vst.msk [vmem:[%s2088_s14 + $0xd] sm:$0x1] %vm498_vm10, %v1205_v4  ;;  %1666 = vst.msk [vmem:[%s2088_s14 + $0x15] sm:$0x1] %vm498_vm10, %v1213_v5 }
 0x120   : > { %1668 = vst.msk [vmem:[%s2088_s14 + $0x25] sm:$0x1] %vm498_vm10, %v1198_v3  ;;  %v1365_v14 = vcombine.high %v1363_v6, %v1363_v6  ;;  %v1379_v15 = vrot.slane %v1363_v6, %v2074_v46  ;;  %v1386_v16 = vrot.slane %v1364_v7, %v2074_v46  ;;  %v1394_v17 = vcombine.high %v1372_v10, %v1372_v10  ;;  %1420 = sbr.rel (!%p1892_p5) target bundleno = 303 (0x12f), region = 77 }
 0x121   : > { %1685 = vst.msk [vmem:[%s2088_s14 + $0x6] sm:$0x1] %vm498_vm10, %v1372_v10  ;;  %v1216_v18 = vcombine.high %v1212_v11, %v1212_v11  ;;  %1667 = vst.msk [vmem:[%s2088_s14 + $0x1d] sm:$0x1] %vm498_vm10, %v1215_v13 }
 0x122   : > { %1669 = vst.msk [vmem:[%s2088_s14 + $0x2d] sm:$0x1] %vm498_vm10, %v1212_v11  ;;  %1670 = vst.msk [vmem:[%s2088_s14 + $0x35] sm:$0x1] %vm498_vm10, %v1214_v12  ;;  %v1393_v19 = vrot.slane %v1365_v14, %v2074_v46  ;;  %v1395_v20 = vcombine.high %v1379_v15, %v1379_v15  ;;  %v1396_v21 = vcombine.high %v1386_v16, %v1386_v16 }
 0x123   : > { %1686 = vst.msk [vmem:[%s2088_s14 + $0xe] sm:$0x1] %vm498_vm10, %v1386_v16  ;;  %1687 = vst.msk [vmem:[%s2088_s14 + $0x16] sm:$0x1] %vm498_vm10, %v1394_v17 }
 0x124   : > { %1689 = vst.msk [vmem:[%s2088_s14 + $0x26] sm:$0x1] %vm498_vm10, %v1379_v15  ;;  %1671 = vst.msk [vmem:[%s2088_s14 + $0x3d] sm:$0x1] %vm498_vm10, %v1216_v18  ;;  %v1397_v23 = vcombine.high %v1393_v19, %v1393_v19 }
 0x125   : > { %1688 = vst.msk [vmem:[%s2088_s14 + $0x1e] sm:$0x1] %vm498_vm10, %v1396_v21  ;;  %1690 = vst.msk [vmem:[%s2088_s14 + $0x2e] sm:$0x1] %vm498_vm10, %v1393_v19 }
 0x126   : > { %1691 = vst.msk [vmem:[%s2088_s14 + $0x36] sm:$0x1] %vm498_vm10, %v1395_v20  ;;  %1692 = vst.msk [vmem:[%s2088_s14 + $0x3e] sm:$0x1] %vm498_vm10, %v1397_v23 }
 0x128   : > { %v1439_v46 = vld [vmem:[%s2088_s14] sm:$0xff]  }
 0x129   : > { %1440 = vst [vmem:[%s1423_s22] sm:$0xff] %v1439_v46  }
 0x12a   : > { %v1443_v24 = vld [vmem:[%s2088_s14 + $0x8] sm:$0xff]   ;;  %v1447_v25 = vld [vmem:[%s2088_s14 + $0x10] sm:$0xff]  }
 0x12b   : > { %v1455_v27 = vld [vmem:[%s2088_s14 + $0x20] sm:$0xff]   ;;  %1444 = vst [vmem:[%s1423_s22 + $0x10] sm:$0xff] %v1443_v24   ;;  %1448 = vst [vmem:[%s1423_s22 + $0x20] sm:$0xff] %v1447_v25  }
 0x12c   : > { %v1451_v26 = vld [vmem:[%s2088_s14 + $0x18] sm:$0xff]   ;;  %v1459_v28 = vld [vmem:[%s2088_s14 + $0x28] sm:$0xff]   ;;  %1456 = vst [vmem:[%s1423_s22 + $0x40] sm:$0xff] %v1455_v27  }
 0x12d   : > { %1452 = vst [vmem:[%s1423_s22 + $0x30] sm:$0xff] %v1451_v26   ;;  %1460 = vst [vmem:[%s1423_s22 + $0x50] sm:$0xff] %v1459_v28   ;;  %v1463_v29 = vld [vmem:[%s2088_s14 + $0x30] sm:$0xff]   ;;  %v1467_v30 = vld [vmem:[%s2088_s14 + $0x38] sm:$0xff]  }
 0x12e   : > { %1464 = vst [vmem:[%s1423_s22 + $0x60] sm:$0xff] %v1463_v29   ;;  %1468 = vst [vmem:[%s1423_s22 + $0x70] sm:$0xff] %v1467_v30  }
 0x12f PF: > { %p10_p11 = scmp.ge.s32.totalorder %s1880_s16, 4   ;;  %s2249_s12 = smov %s1831_s13 }
 0x130   : > { %s2250_s13 = smov %s1890_s19  ;;  %s2251_s14 = smov %s1880_s16 }
 0x131   :  { %12 = sbr.rel (!%p10_p11) target bundleno = 2 (0x2), region = 162 }

</bundles_post_ra>
